<compile_context>
chip_gen: v7x
topology: tpu7x:2x2x1
jax: 0.10.0
libtpu: 0.0.40
codegen_flags: <defaults>
</compile_context>

<pallas_src>
import functools

import jax
import jax.numpy as jnp
from jax.experimental import pallas as pl
from jax.experimental.pallas import tpu as pltpu

# ---- deterministic "tokenizer" constants (ESM-style amino-acid vocab) -------
PAD_ID = 1
CLS_ID = 0
EOS_ID = 2
MASK_ID = 32
VOCAB_SIZE = 33

# ---- module hyper-parameters (small, consistent with defaults) --------------
PATCH_SIZE = 4
MAX_SEQ_LENGTH = 256
MAX_NUM_PATCHES = 128          # module default is 512; kept small but lane-dense
RESIDUE_MASK_PROB = 0.15
SEED = 42

# Integer-domain Bernoulli thresholds on a raw uint32 draw u:
#   u <  _T_MASK                -> masked, replaced by [MASK]   (0.15 * 0.8 = 0.12)
#   _T_MASK <= u < _T_RAND      -> masked, replaced by random   (0.15 * 0.1 = 0.015)
#   _T_RAND <= u < _T_SELECT    -> masked, kept as-is           (0.15 * 0.1 = 0.015)
#   u >= _T_SELECT              -> not masked                   (0.85)
_T_MASK = int(RESIDUE_MASK_PROB * 0.8 * 2**32)
_T_RAND = int(RESIDUE_MASK_PROB * 0.9 * 2**32)
_T_SELECT = int(RESIDUE_MASK_PROB * 2**32)

# TODO(synk): the num_patches > max_num_patches truncation / random_truncation
# branch and the 'clm' / patch_mask_probability>0 branches are data-dependent
# host-side control flow not exercised by the defaults; only the default 'mlm'
# static-patching path is implemented.
# NOTE: the static patcher assumes non-pad tokens form a contiguous prefix
# (seq_len = count of non-PAD), which is the tokenizer contract here.


def _mix32(x):
    """32-bit integer finalizer (lowbias32 constants); uint32 in -> uint32 out."""
    x = x ^ (x >> 16)
    x = x * jnp.uint32(0x7FEB352D)
    x = x ^ (x >> 15)
    x = x * jnp.uint32(0x846CA68B)
    x = x ^ (x >> 16)
    return x


def _patchifier_kernel(ids_ref,             # (TB, L) int16
                       out_ids_ref,         # (TB, L) int16 (aliased to input)
                       labels_ref,          # (TB, L) int16
                       attn_ref,            # (TB, L) int8  (0/1)
                       plen_ref,            # (TB, P) int32
                       attn_patch_ref,      # (TB, P) int8  (0/1)
                       *, seed: int):
    # Narrow HBM/VMEM read; widen once in-vreg (cheap unpack) for the logic.
    ids = ids_ref[...].astype(jnp.int32)
    tb, seq_l = ids.shape
    num_p = plen_ref.shape[1]

    pad_mask = ids == PAD_ID
    nonpad = jnp.logical_not(pad_mask)                       # reused twice
    special = pad_mask | (ids == CLS_ID) | (ids == EOS_ID)

    # ---- static patcher on the non-pad tokens (per row) ---------------------
    # patch i covers tokens [i*patch_size, min((i+1)*patch_size, seq_len))
    seq_len = jnp.sum(nonpad.astype(jnp.int32), axis=1, keepdims=True)  # (TB,1)
    p_idx = jax.lax.broadcasted_iota(jnp.int32, (tb, num_p), 1)
    plen = jnp.clip(seq_len - p_idx * PATCH_SIZE, 0, PATCH_SIZE)
    plen_ref[...] = plen
    attn_patch_ref[...] = (plen > 0).astype(jnp.int8)

    # ---- MLM residue masking: one counter-hash draw, integer thresholds -----
    row = jax.lax.broadcasted_iota(jnp.int32, (tb, seq_l), 0)
    col = jax.lax.broadcasted_iota(jnp.int32, (tb, seq_l), 1)
    g_row = pl.program_id(0) * tb + row                       # global batch row
    counter = (g_row * seq_l + col).astype(jnp.uint32)        # unique per element

    seed_u = jnp.uint32(seed & 0xFFFFFFFF)
    u = _mix32(counter ^ seed_u)                              # single decision word

    selected = (u < jnp.uint32(_T_SELECT)) & jnp.logical_not(special)
    # labels: original ids where masked, -100 elsewhere (stored int16)
    labels = jnp.where(selected, ids, jnp.int32(-100))
    labels_ref[...] = labels.astype(jnp.int16)

    to_mask = selected & (u < jnp.uint32(_T_MASK))
    to_rand = selected & (u < jnp.uint32(_T_RAND)) & jnp.logical_not(to_mask)

    # random residue in [4, VOCAB_SIZE) from the *low* 16 bits of u (bias <= ~2^-16);
    # avoids a second _mix32 hash that was only consumed on 1.5% of positions.
    rand_tok = (jnp.uint32(4)
                + (((u & jnp.uint32(0xFFFF)) * jnp.uint32(VOCAB_SIZE - 4)) >> 16)
                ).astype(jnp.int32)

    new_ids = jnp.where(to_mask, jnp.int32(MASK_ID), ids)
    new_ids = jnp.where(to_rand, rand_tok, new_ids)
    out_ids_ref[...] = new_ids.astype(jnp.int16)

    # MLM replacement never produces PAD (MASK_ID=32, rand_tok in [4,33)),
    # so attention_mask == ~pad_mask -- reuse the vreg already computed.
    attn_ref[...] = nonpad.astype(jnp.int8)


def _pick_row_block(batch: int, cap: int = 2048) -> int:
    """Largest multiple-of-32 divisor of `batch` (<= cap), preferring grid >= 2.

    Per row the block holds ~2.4 KiB across all 6 arrays (~4.75 KiB double-
    buffered), so TB=2048 is ~9.7 MiB -- under v5e's 16 MiB scoped-VMEM default
    and well under v7x's 64 MiB per-TC VMEM.  A grid of >= 2 lets the
    "parallel" batch axis shard across v7x's two TensorCores.
    """
    best = None
    for tb in (2048, 1024, 512, 256, 128, 64, 32):
        if tb <= cap and batch % tb == 0:
            if best is None:
                best = tb                  # largest block (may be grid=1)
            if batch // tb >= 2:
                return tb                  # largest block with grid >= 2
    if best is not None:
        return best
    return batch                           # block == full array dims is always legal


def patchifier_transform(input_ids: jax.Array,
                         seed: int = SEED,
                         max_num_patches: int = MAX_NUM_PATCHES,
                         row_block: int | None = None):
    """input_ids: (B, max_seq_length) integer array, pre-tokenized & padded."""
    ids = jnp.asarray(input_ids)
    if ids.dtype != jnp.int16:             # keep narrow dtype end-to-end (vocab <= 33)
        ids = ids.astype(jnp.int16)
    B, L = ids.shape
    P = max_num_patches
    TB = row_block if row_block is not None else _pick_row_block(B)
    assert B % TB == 0, "batch must be divisible by the row block"

    seq_spec = pl.BlockSpec((TB, L), lambda i: (i, 0))
    pat_spec = pl.BlockSpec((TB, P), lambda i: (i, 0))

    # advisory hint for the XLA scheduler (int-op count as flops proxy)
    cost = pl.CostEstimate(flops=25 * B * L,
                           transcendentals=0,
                           bytes_accessed=B * (7 * L + 5 * P))

    out = pl.pallas_call(
        functools.partial(_patchifier_kernel, seed=int(seed)),
        out_shape=(
            jax.ShapeDtypeStruct((B, L), jnp.int16),   # input_ids (masked)
            jax.ShapeDtypeStruct((B, L), jnp.int16),   # labels
            jax.ShapeDtypeStruct((B, L), jnp.int8),    # attention_mask
            jax.ShapeDtypeStruct((B, P), jnp.int32),   # patch_lengths
            jax.ShapeDtypeStruct((B, P), jnp.int8),    # attention_mask_patch
        ),
        grid=(B // TB,),
        in_specs=[seq_spec],
        out_specs=(seq_spec, seq_spec, seq_spec, pat_spec, pat_spec),
        input_output_aliases={0: 0},                   # masked ids reuse input HBM buf
        cost_estimate=cost,
        compiler_params=pltpu.CompilerParams(
            dimension_semantics=("parallel",)),
    )(ids)

    ids_out, labels, attn, plen, attn_p = out
    return {
        "input_ids": ids_out,              # int16 (vocab <= 33)
        "attention_mask": attn,            # int8 {0,1}
        "patch_lengths": plen,             # int32
        "attention_mask_patch": attn_p,    # int8 {0,1}
        "labels": labels,                  # int16 (-100 or token id)
    }


def _make_example_batch(key, batch: int, length: int):
    """Deterministic pre-tokenized batch: [CLS] res... [EOS] pad... per row."""
    residues = jax.random.randint(key, (batch, length), 4, VOCAB_SIZE, dtype=jnp.int32)
    n = (60 + (jnp.arange(batch, dtype=jnp.int32) * 7) % 140)[:, None]  # residues/row
    col = jnp.arange(length, dtype=jnp.int32)[None, :]
    ids = jnp.where(col == 0, CLS_ID,
          jnp.where(col <= n, residues,
          jnp.where(col == n + 1, EOS_ID, PAD_ID)))
    return ids.astype(jnp.int16)


if __name__ == "__main__":
    key = jax.random.PRNGKey(0)
    B, L, P = 64, MAX_SEQ_LENGTH, MAX_NUM_PATCHES
    input_ids = _make_example_batch(key, B, L)
    # Keep a definitely-distinct buffer for the reference checks (the kernel
    # output aliases its input buffer inside a jit; eager callers are safe, but
    # this keeps the asserts independent of aliasing behavior).
    ref_ids = input_ids + jnp.int16(0)

    # _pick_row_block(64) -> TB=32, grid=(2,): exercises the tiled/parallel path.
    enc = patchifier_transform(input_ids, seed=SEED)
    jax.block_until_ready(enc)

    out_ids = enc["input_ids"]
    labels = enc["labels"]
    attn = enc["attention_mask"]
    plen = enc["patch_lengths"]
    attn_p = enc["attention_mask_patch"]

    # shapes
    assert out_ids.shape == (B, L) and labels.shape == (B, L)
    assert attn.shape == (B, L)
    assert plen.shape == (B, P) and attn_p.shape == (B, P)

    # patcher invariants (per row)
    seq_len = jnp.sum(ref_ids != PAD_ID, axis=1)
    assert bool(jnp.all(jnp.sum(plen, axis=1) == seq_len))
    assert bool(jnp.all(jnp.sum(attn_p.astype(jnp.int32), axis=1)
                        == -(-seq_len // PATCH_SIZE)))

    # attention_mask == non-pad
    assert bool(jnp.all((attn != 0) == (ref_ids != PAD_ID)))

    masked = labels != -100
    # masked positions keep original ids in labels
    assert bool(jnp.all(jnp.where(masked, labels, ref_ids) == ref_ids))
    # special / pad positions never masked
    special = (ref_ids == PAD_ID) | (ref_ids == CLS_ID) | (ref_ids == EOS_ID)
    assert not bool(jnp.any(masked & special))
    # unmasked positions are unchanged in the output ids
    assert bool(jnp.all(jnp.where(masked, ref_ids, out_ids) == ref_ids))
    # masked positions hold [MASK], a residue in [4, vocab), or the original
    ok_vals = ((out_ids == MASK_ID)
               | ((out_ids >= 4) & (out_ids < VOCAB_SIZE))
               | (out_ids == ref_ids))
    assert bool(jnp.all(jnp.where(masked, ok_vals, True)))
    # loose distributional check: ~15% of non-special tokens masked
    frac = float(jnp.sum(masked) / jnp.maximum(jnp.sum(~special), 1))
    assert 0.05 < frac < 0.30

    print("KERNEL_OK")
</pallas_src>

<mosaic_0001>
module attributes {stable_mosaic.version = 11 : i64} {
  func.func @_patchifier_kernel(%arg0: i32, %arg1: memref<32x256xi16, #tpu.memory_space<vmem>>, %arg2: memref<32x256xi16, #tpu.memory_space<vmem>>, %arg3: memref<32x256xi16, #tpu.memory_space<vmem>>, %arg4: memref<32x256xi8, #tpu.memory_space<vmem>>, %arg5: memref<32x128xi32, #tpu.memory_space<vmem>>, %arg6: memref<32x128xi8, #tpu.memory_space<vmem>>) attributes {dimension_semantics = [#tpu.dimension_semantics<parallel>], iteration_bounds = array<i64: 2>, scalar_prefetch = 0 : i64, scratch_operands = 0 : i64, tpu.core_type = #tpu.core_type<tc>, window_params = [{transform_indices = @transform_0, window_bounds = array<i64: 32, 256>}, {transform_indices = @transform_1, window_bounds = array<i64: 32, 256>}, {transform_indices = @transform_2, window_bounds = array<i64: 32, 256>}, {transform_indices = @transform_3, window_bounds = array<i64: 32, 256>}, {transform_indices = @transform_4, window_bounds = array<i64: 32, 128>}, {transform_indices = @transform_5, window_bounds = array<i64: 32, 128>}]} {
    %c0 = arith.constant 0 : index
    %c0_0 = arith.constant 0 : index
    %0 = vector.load %arg1[%c0, %c0_0] : memref<32x256xi16, #tpu.memory_space<vmem>>, vector<32x256xi16>
    %1 = arith.extsi %0 : vector<32x256xi16> to vector<32x256xi32>
    %c1_i32 = arith.constant 1 : i32
    %2 = vector.broadcast %c1_i32 : i32 to vector<32x256xi32>
    %3 = arith.cmpi eq, %1, %2 : vector<32x256xi32>
    %cst = arith.constant dense<true> : vector<32x256xi1>
    %4 = arith.xori %3, %cst : vector<32x256xi1>
    %c0_i32 = arith.constant 0 : i32
    %5 = vector.broadcast %c0_i32 : i32 to vector<32x256xi32>
    %6 = arith.cmpi eq, %1, %5 : vector<32x256xi32>
    %7 = arith.ori %3, %6 : vector<32x256xi1>
    %c2_i32 = arith.constant 2 : i32
    %8 = vector.broadcast %c2_i32 : i32 to vector<32x256xi32>
    %9 = arith.cmpi eq, %1, %8 : vector<32x256xi32>
    %10 = arith.ori %7, %9 : vector<32x256xi1>
    %11 = arith.extui %4 : vector<32x256xi1> to vector<32x256xi32>
    %cst_1 = arith.constant dense<0> : vector<32xi32>
    %12 = vector.multi_reduction <add>, %11, %cst_1 [1] : vector<32x256xi32> to vector<32xi32>
    %13 = vector.shape_cast %12 : vector<32xi32> to vector<32x1xi32>
    %14 = tpu.iota {dimensions = array<i32: 1>} : vector<32x128xi32>
    %c4_i32 = arith.constant 4 : i32
    %15 = vector.broadcast %c4_i32 : i32 to vector<32x128xi32>
    %16 = arith.muli %14, %15 : vector<32x128xi32>
    %17 = vector.broadcast %13 : vector<32x1xi32> to vector<32x128xi32>
    %18 = arith.subi %17, %16 : vector<32x128xi32>
    %c0_i32_2 = arith.constant 0 : i32
    %c4_i32_3 = arith.constant 4 : i32
    %19 = vector.broadcast %c0_i32_2 : i32 to vector<32x128xi32>
    %20 = arith.maxsi %19, %18 : vector<32x128xi32>
    %21 = vector.broadcast %c4_i32_3 : i32 to vector<32x128xi32>
    %22 = arith.minsi %21, %20 : vector<32x128xi32>
    %c0_4 = arith.constant 0 : index
    %c0_5 = arith.constant 0 : index
    %23 = vector.load %arg5[%c0_4, %c0_5] : memref<32x128xi32, #tpu.memory_space<vmem>>, vector<32x128xi32>
    tpu.vector_store %arg5[%c0_4, %c0_5], %22 {strides = array<i32>} : memref<32x128xi32, #tpu.memory_space<vmem>>, vector<32x128xi32>,
    %c0_i32_6 = arith.constant 0 : i32
    %24 = vector.broadcast %c0_i32_6 : i32 to vector<32x128xi32>
    %25 = arith.cmpi sgt, %22, %24 : vector<32x128xi32>
    %26 = arith.extui %25 : vector<32x128xi1> to vector<32x128xi8>
    %c0_7 = arith.constant 0 : index
    %c0_8 = arith.constant 0 : index
    %27 = vector.load %arg6[%c0_7, %c0_8] : memref<32x128xi8, #tpu.memory_space<vmem>>, vector<32x128xi8>
    tpu.vector_store %arg6[%c0_7, %c0_8], %26 {strides = array<i32>} : memref<32x128xi8, #tpu.memory_space<vmem>>, vector<32x128xi8>,
    %28 = tpu.iota {dimensions = array<i32: 0>} : vector<32x256xi32>
    %29 = tpu.iota {dimensions = array<i32: 1>} : vector<32x256xi32>
    %c32_i32 = arith.constant 32 : i32
    %30 = arith.muli %arg0, %c32_i32 : i32
    %31 = vector.broadcast %30 : i32 to vector<32x256xi32>
    %32 = arith.addi %31, %28 : vector<32x256xi32>
    %c256_i32 = arith.constant 256 : i32
    %33 = vector.broadcast %c256_i32 : i32 to vector<32x256xi32>
    %34 = arith.muli %32, %33 : vector<32x256xi32>
    %35 = arith.addi %34, %29 : vector<32x256xi32>
    %c42_i32 = arith.constant 42 : i32
    %36 = vector.broadcast %c42_i32 : i32 to vector<32x256xi32>
    %37 = arith.xori %35, %36 : vector<32x256xi32>
    %c16_i32 = arith.constant 16 : i32
    %38 = vector.broadcast %c16_i32 : i32 to vector<32x256xi32>
    %39 = arith.shrui %37, %38 : vector<32x256xi32>
    %40 = arith.xori %37, %39 : vector<32x256xi32>
    %c2146121005_i32 = arith.constant 2146121005 : i32
    %41 = vector.broadcast %c2146121005_i32 : i32 to vector<32x256xi32>
    %42 = arith.muli %40, %41 : vector<32x256xi32>
    %c15_i32 = arith.constant 15 : i32
    %43 = vector.broadcast %c15_i32 : i32 to vector<32x256xi32>
    %44 = arith.shrui %42, %43 : vector<32x256xi32>
    %45 = arith.xori %42, %44 : vector<32x256xi32>
    %c-2073254261_i32 = arith.constant -2073254261 : i32
    %46 = vector.broadcast %c-2073254261_i32 : i32 to vector<32x256xi32>
    %47 = arith.muli %45, %46 : vector<32x256xi32>
    %c16_i32_9 = arith.constant 16 : i32
    %48 = vector.broadcast %c16_i32_9 : i32 to vector<32x256xi32>
    %49 = arith.shrui %47, %48 : vector<32x256xi32>
    %50 = arith.xori %47, %49 : vector<32x256xi32>
    %c644245094_i32 = arith.constant 644245094 : i32
    %51 = vector.broadcast %c644245094_i32 : i32 to vector<32x256xi32>
    %52 = arith.cmpi ult, %50, %51 : vector<32x256xi32>
    %cst_10 = arith.constant dense<true> : vector<32x256xi1>
    %53 = arith.xori %10, %cst_10 : vector<32x256xi1>
    %54 = arith.andi %52, %53 : vector<32x256xi1>
    %c-100_i32 = arith.constant -100 : i32
    %55 = vector.broadcast %c-100_i32 : i32 to vector<32x256xi32>
    %56 = arith.select %54, %1, %55 : vector<32x256xi1>, vector<32x256xi32>
    %57 = arith.trunci %56 : vector<32x256xi32> to vector<32x256xi16>
    %c0_11 = arith.constant 0 : index
    %c0_12 = arith.constant 0 : index
    %58 = vector.load %arg3[%c0_11, %c0_12] : memref<32x256xi16, #tpu.memory_space<vmem>>, vector<32x256xi16>
    tpu.vector_store %arg3[%c0_11, %c0_12], %57 {strides = array<i32>} : memref<32x256xi16, #tpu.memory_space<vmem>>, vector<32x256xi16>,
    %c515396075_i32 = arith.constant 515396075 : i32
    %59 = vector.broadcast %c515396075_i32 : i32 to vector<32x256xi32>
    %60 = arith.cmpi ult, %50, %59 : vector<32x256xi32>
    %61 = arith.andi %54, %60 : vector<32x256xi1>
    %c579820584_i32 = arith.constant 579820584 : i32
    %62 = vector.broadcast %c579820584_i32 : i32 to vector<32x256xi32>
    %63 = arith.cmpi ult, %50, %62 : vector<32x256xi32>
    %64 = arith.andi %54, %63 : vector<32x256xi1>
    %cst_13 = arith.constant dense<true> : vector<32x256xi1>
    %65 = arith.xori %61, %cst_13 : vector<32x256xi1>
    %66 = arith.andi %64, %65 : vector<32x256xi1>
    %c65535_i32 = arith.constant 65535 : i32
    %67 = vector.broadcast %c65535_i32 : i32 to vector<32x256xi32>
    %68 = arith.andi %50, %67 : vector<32x256xi32>
    %c29_i32 = arith.constant 29 : i32
    %69 = vector.broadcast %c29_i32 : i32 to vector<32x256xi32>
    %70 = arith.muli %68, %69 : vector<32x256xi32>
    %c16_i32_14 = arith.constant 16 : i32
    %71 = vector.broadcast %c16_i32_14 : i32 to vector<32x256xi32>
    %72 = arith.shrui %70, %71 : vector<32x256xi32>
    %c4_i32_15 = arith.constant 4 : i32
    %73 = vector.broadcast %c4_i32_15 : i32 to vector<32x256xi32>
    %74 = arith.addi %73, %72 : vector<32x256xi32>
    %c32_i32_16 = arith.constant 32 : i32
    %75 = vector.broadcast %c32_i32_16 : i32 to vector<32x256xi32>
    %76 = arith.select %61, %75, %1 : vector<32x256xi1>, vector<32x256xi32>
    %77 = arith.select %66, %74, %76 : vector<32x256xi1>, vector<32x256xi32>
    %78 = arith.trunci %77 : vector<32x256xi32> to vector<32x256xi16>
    %c0_17 = arith.constant 0 : index
    %c0_18 = arith.constant 0 : index
    %79 = vector.load %arg2[%c0_17, %c0_18] : memref<32x256xi16, #tpu.memory_space<vmem>>, vector<32x256xi16>
    tpu.vector_store %arg2[%c0_17, %c0_18], %78 {strides = array<i32>} : memref<32x256xi16, #tpu.memory_space<vmem>>, vector<32x256xi16>,
    %80 = arith.extui %4 : vector<32x256xi1> to vector<32x256xi8>
    %c0_19 = arith.constant 0 : index
    %c0_20 = arith.constant 0 : index
    %81 = vector.load %arg4[%c0_19, %c0_20] : memref<32x256xi8, #tpu.memory_space<vmem>>, vector<32x256xi8>
    tpu.vector_store %arg4[%c0_19, %c0_20], %80 {strides = array<i32>} : memref<32x256xi8, #tpu.memory_space<vmem>>, vector<32x256xi8>,
    return
  }
  func.func @transform_0(%arg0: i32) -> (i32, i32) {
    %c0_i32 = arith.constant 0 : i32
    %c0_i32_0 = arith.constant 0 : i32
    return %arg0, %c0_i32 : i32, i32
  }
  func.func @transform_1(%arg0: i32) -> (i32, i32) {
    %c0_i32 = arith.constant 0 : i32
    %c0_i32_0 = arith.constant 0 : i32
    return %arg0, %c0_i32 : i32, i32
  }
  func.func @transform_2(%arg0: i32) -> (i32, i32) {
    %c0_i32 = arith.constant 0 : i32
    %c0_i32_0 = arith.constant 0 : i32
    return %arg0, %c0_i32 : i32, i32
  }
  func.func @transform_3(%arg0: i32) -> (i32, i32) {
    %c0_i32 = arith.constant 0 : i32
    %c0_i32_0 = arith.constant 0 : i32
    return %arg0, %c0_i32 : i32, i32
  }
  func.func @transform_4(%arg0: i32) -> (i32, i32) {
    %c0_i32 = arith.constant 0 : i32
    %c0_i32_0 = arith.constant 0 : i32
    return %arg0, %c0_i32 : i32, i32
  }
  func.func @transform_5(%arg0: i32) -> (i32, i32) {
    %c0_i32 = arith.constant 0 : i32
    %c0_i32_0 = arith.constant 0 : i32
    return %arg0, %c0_i32 : i32, i32
  }
}

</mosaic_0001>

<bundles_post_ra>
// kernel: tpu_custom_call.1
= control target key start
LH: loop header
LB: loop body
LE: loop exit
PB: predicated region body
PF: predicated region fallthrough
CT: control target
= control target key end

     0   :  { %11 = vsyncpa [#allocation3], 0  ;;  %s2081_s0 = inlined_call_operand.vmem [shape: s16[64,256], index: 0, kind: input, shape index: {}, may-alias: {0,1}]   ;;  %s2082_s1 = inlined_call_operand.vmem [shape: s16[64,256], index: 1, kind: output, shape index: {0}, may-alias: {0,1}]   ;;  %s2083_s2 = inlined_call_operand.vmem [shape: s16[64,256], index: 2, kind: output, shape index: {1}]   ;;  %s2084_s3 = inlined_call_operand.hbm [shape: s8[64,256], index: 3, kind: output, shape index: {2}]   ;;  %s2085_s4 = inlined_call_operand.hbm [shape: s32[64,128], index: 4, kind: output, shape index: {3}]   ;;  %s2086_s5 = inlined_call_operand.hbm [shape: s8[64,128], index: 5, kind: output, shape index: {4}]  }
   0x1   :  { %13 = vsyncpa [#allocation3 + $0x1], 0 }
   0x2   :  { %14 = vsyncpa [#allocation5], 0 }
   0x3   :  { %16 = vsyncpa [#allocation5 + $0x1], 0  ;;  %s1177_s18 = smov 0   ;;  %s1179_s19 = smov 0  }
   0x4   :  { %s1181_s20 = smov 0   ;;  %s1183_s21 = smov 0  }
   0x5 LB: > { %s1198_s22 = sadd.s32 4294967295, %s1138_s21   ;;  %s931_s23 = sadd.s32 4294967294, %s1138_s21   ;;  %s1138_s21 = sphi %s1183_s21, %s2292_s21   ;;  %s1134_s20 = sphi %s1181_s20, %s2291_s20   ;;  %s1130_s19 = sphi %s1179_s19, %s2290_s19   ;;  %s1126_s18 = sphi %s1177_s18, %s2289_s18  }
   0x6   : > { %s1202_s24 = sadd.s32 1, %s1138_s21   ;;  %s107_s25 = sadd.s32 1, %s1134_s20 }
   0x7   : > { %s104_s26 = ssub.s32 %s1138_s21, %s1202_s24  ;;  %p117_p0 = scmp.ne.s32.totalorder %s1134_s20, %s1130_s19 }
   0x8   : > { %p105_p1 = scmp.eq.s32.totalorder %s104_s26, 0  ;;  %p118_p2 = scmp.eq.s32.totalorder %s1198_s22, 1 }
   0x9   : > { %p123_p3 = scmp.ne.s32.totalorder %s1130_s19, %s1126_s18  ;;  %p124_p4 = scmp.eq.s32.totalorder %s931_s23, 1 }
   0xa   : > { %s1215_s27 = scalar_select %p105_p1, %s1134_s20, %s107_s25  }
   0xb   : > { %p1217_p5 = por %p118_p2, %p117_p0  ;;  %p1221_p6 = por %p124_p4, %p123_p3 }
   0xc   : > { %p934_p7 = scmp.ge.s32.totalorder %s1138_s21, 1  ;;  %p204_p8 = scmp.lt.s32.totalorder %s1138_s21, 3 }
   0xe   : > { %p205_p9 = pnand %p934_p7, %p204_p8 }
   0xf   : > { %s938_s30 = sshll.u32 (!%p205_p9), %s1198_s22, 2  ;;  %v399_v0 = vlaneseq (!%p205_p9)  ;;  %s947_s6 = sshll.u32 (!%p205_p9), %s1198_s22, 5  ;;  %vm2095_vm2 = vmmov (!%p205_p9), 1   ;;  %v2118_v13 = vmov (!%p205_p9), 0  ;;  %v2120_v15 = vmov (!%p205_p9), 0 }
  0x10   : > { %208 = sbr.rel (%p205_p9) target bundleno = 266 (0x10a), region = 24  ;;  %p256_p10 = scmp.lt.s32.totalorder (!%p205_p9), %s938_s30, 7  ;;  %v442_v4 = vstv (!%p205_p9), %s947_s6  ;;  %v1141_v16 = vmov (!%p205_p9), 0   ;;  %v2156_v56 = vmov (!%p205_p9), 0 }
  0x11   : > { %v436_v1 = vshrl.u32 (!%p205_p9), %v399_v0, 7  ;;  %v1240_v8 = vand.u32 (!%p205_p9), 127, %v399_v0  ;;  %s944_s11 = sshll.u32 (!%p205_p9), %s1198_s22, 1  ;;  %s1142_s15 = smov (!%p205_p9), [#allocation2]  }
  0x12   : > { %p1621_p11 = scmp.lt.s32.totalorder (!%p205_p9), %s944_s11, 3 }
  0x13   : > { %v438_v2 = vadd.s32 (!%p205_p9), 16, %v436_v1  ;;  %v439_v3 = vadd.s32 (!%p205_p9), 24, %v436_v1  ;;  %v1256_v14 = vadd.s32 (!%p205_p9), 128, %v1240_v8  ;;  %v437_v26 = vadd.s32 (!%p205_p9), 8, %v436_v1 }
  0x14   : > { %v443_v27 = vadd.s32 (!%p205_p9), %v442_v4, %v436_v1 }
  0x15   : > { %v445_v5 = vadd.s32 (!%p205_p9), %v442_v4, %v438_v2  ;;  %v446_v6 = vadd.s32 (!%p205_p9), %v442_v4, %v439_v3  ;;  %v444_v40 = vadd.s32 (!%p205_p9), %v442_v4, %v437_v26 }
  0x16   : > { %v447_v41 = vmul.u32 (!%p205_p9), 256, %v443_v27 }
  0x17   : > { %s2294_s30 = smov (!%p256_p10, %s938_s30), 7  ;;  %v449_v11 = vmul.u32 256, %v445_v5  ;;  %v450_v12 = vmul.u32 256, %v446_v6  ;;  %s2296_s11 = smov (!%p1621_p11, %s944_s11), 3 }
  0x18   : > { %s958_s7 = sshll.u32 %s2294_s30, 3  ;;  %v448_v54 = vmul.u32 256, %v444_v40  ;;  %v451_v59 = vadd.s32 %v447_v41, %v1240_v8  ;;  %v452_v2 = vadd.s32 %v447_v41, %v1256_v14  ;;  %s960_s13 = sshll.u32 %s2296_s11, 4 }
  0x19   : > { %s1237_s10 = scalar_lea.vmem %s2081_s0, %s958_s7  ;;  %v455_v19 = vadd.s32 %v449_v11, %v1240_v8  ;;  %v456_v20 = vadd.s32 %v449_v11, %v1256_v14  ;;  %v457_v22 = vadd.s32 %v450_v12, %v1240_v8  ;;  %v458_v23 = vadd.s32 %v450_v12, %v1256_v14  ;;  %s274_s16 = scalar_lea.vmem %s2083_s2, %s960_s13 }
  0x1a   : > { %v281_v7 = vld [vmem:[%s1237_s10 + $0x10] sm:$0xff]  ;;  %v282_v31 = vld [vmem:[%s1237_s10 + $0x18] sm:$0xff]  ;;  %v279_v37 = vld [vmem:[%s1237_s10] sm:$0xff]  ;;  %v453_v3 = vadd.s32 %v448_v54, %v1240_v8  ;;  %v454_v6 = vadd.s32 %v448_v54, %v1256_v14  ;;  %v2132_v14 = vmov 0  ;;  %s267_s26 = scalar_lea.vmem %s2082_s1, %s958_s7  ;;  %s1950_s30 = sand.u32 1, %s1130_s19  }
  0x1b   : > { %v1242_v9 = vunpack.c.l.b16 %v281_v7  ;;  %v1244_v10 = vunpack.c.h.b16 %v281_v7  ;;  %v463_v24 = vxor.u32 42, %v455_v19  ;;  %v464_v25 = vxor.u32 42, %v456_v20  ;;  %v280_v5 = vld [vmem:[%s1237_s10 + $0x8] sm:$0xff]  ;;  %s935_s6 = sshll.u32 %s1950_s30, 4  ;;  %s961_s7 = sshll.u32 %s1198_s22, 8 }
  0x1c   : > { %v465_v29 = vxor.u32 42, %v457_v22  ;;  %v466_v30 = vxor.u32 42, %v458_v23  ;;  %v1280_v42 = vunpack.c.l.b16 %v282_v31  ;;  %v1282_v43 = vunpack.c.h.b16 %v282_v31  ;;  %s240_s8 = scalar_lea.vmem [#allocation2], %s935_s6  ;;  %s1959_s11 = scalar_lea.hbm %s2084_s3, %s961_s7 }
  0x1d   : > { %vm295_vm0 = vcmp.eq.s32.totalorder %v1242_v9, 1  ;;  %vm296_vm1 = vcmp.eq.s32.totalorder %v1244_v10, 1  ;;  %v471_v32 = vshrl.u32 %v463_v24, 16  ;;  %v472_v33 = vshrl.u32 %v464_v25, 16  ;;  %s730_s12 = sshll.u32 %s240_s8, 4  ;;  %s698_s13 = scalar_lea.sflag [#allocation3], %s1950_s30  ;;  %s731_s12 = int_to_ptr.vmem [resolvable:$true] %s730_s12 }
  0x1e   : > { %vm1251_vm3 = vmxor %vm295_vm0, %vm2095_vm2  ;;  %v473_v35 = vshrl.u32 %v465_v29, 16  ;;  %v474_v36 = vshrl.u32 %v466_v30, 16  ;;  %v1284_v48 = vunpack.c.l.b16 %v279_v37  ;;  %vm311_vm5 = vcmp.eq.s32.totalorder %v1242_v9, 0  ;;  %s1016_s14 = scalar_lea.vmem %s731_s12, 256 }
  0x1f   : > { %v2119_v13 = vsel %vm1251_vm3, 4294967295, %v2118_v13  ;;  %vm1261_vm4 = vmxor %vm296_vm1, %vm2095_vm2  ;;  %v343_v17 = vsel %vm1251_vm3, 1, %v1141_v16  ;;  %v479_v38 = vxor.u32 %v471_v32, %v463_v24  ;;  %v480_v39 = vxor.u32 %v472_v33, %v464_v25  ;;  %p1017_p12 = scmp.ne.s32.totalorder %s731_s12, %s1016_s14 }
  0x20   : > { %v2121_v15 = vsel %vm1261_vm4, 4294967295, %v2120_v15  ;;  %v344_v18 = vsel %vm1261_vm4, 1, %v1141_v16  ;;  %v481_v44 = vxor.u32 %v473_v35, %v465_v29  ;;  %v482_v45 = vxor.u32 %v474_v36, %v466_v30  ;;  %vm1296_vm11 = vmor %vm295_vm0, %vm311_vm5 }
  0x21   : > { %v1273_v21 = vadd.s32 %v344_v18, %v343_v17  ;;  %v487_v46 = vmul.u32 2146121005, %v479_v38  ;;  %v488_v47 = vmul.u32 2146121005, %v480_v39  ;;  %v1287_v51 = vunpack.c.h.b16 %v279_v37  ;;  %p1018_p13 = pnand %p1017_p12, %p1217_p5 }
  0x22   : > { %v489_v49 = vmul.u32 2146121005, %v481_v44  ;;  %v490_v50 = vmul.u32 2146121005, %v482_v45  ;;  %vm312_vm6 = vcmp.eq.s32.totalorder %v1244_v10, 0  ;;  %vm297_vm7 = vcmp.eq.s32.totalorder %v1280_v42, 1 }
  0x23   : > { %v375_v28 = vshrl.u32 %v1273_v21, 16  ;;  %v495_v52 = vshrl.u32 %v487_v46, 15  ;;  %v496_v53 = vshrl.u32 %v488_v47, 15  ;;  %vm2087_vm8 = vcmp.eq.s32.totalorder %v1282_v43, 1  ;;  %vm1303_vm12 = vmor %vm296_vm1, %vm312_vm6  ;;  %p1019_p0 = pneg %p1018_p13 }
  0x24   : > { %vm313_vm9 = vcmp.eq.s32.totalorder %v1280_v42, 0  ;;  %v497_v55 = vshrl.u32 %v489_v49, 15  ;;  %vm314_vm10 = vcmp.eq.s32.totalorder %v1282_v43, 0  ;;  %v498_v61 = vshrl.u32 %v490_v50, 15 }
  0x25   : > { %v377_v34 = vcvt.s32.f32 %v375_v28  ;;  %v503_v57 = vxor.u32 %v495_v52, %v487_v46  ;;  %v504_v58 = vxor.u32 %v496_v53, %v488_v47  ;;  %vm2088_vm13 = vcmp.eq.s32.totalorder %v1284_v48, 1  ;;  %vm1311_vm15 = vmor %vm297_vm7, %vm313_vm9 }
  0x26   : > { %v505_v62 = vxor.u32 %v497_v55, %v489_v49  ;;  %vm2089_vm14 = vcmp.eq.s32.totalorder %v1287_v51, 1  ;;  %vm1321_vm0 = vmor %vm2087_vm8, %vm314_vm10  ;;  %vm327_vm1 = vcmp.eq.s32.totalorder %v1242_v9, 2  ;;  %vm328_vm5 = vcmp.eq.s32.totalorder %v1244_v10, 2 }
  0x27   : > { %380 = vadd.xlane.f32.xlu1 %v377_v34  ;;  %v511_v0 = vmul.u32 2221713035, %v503_v57  ;;  %v512_v1 = vmul.u32 2221713035, %v504_v58  ;;  %vm1332_vm6 = vmxor %vm2088_vm13, %vm2095_vm2  ;;  %v2130_v17 = vmov 0  ;;  %v459_v18 = vxor.u32 42, %v451_v59 }
  0x28   : > { %v513_v7 = vmul.u32 2221713035, %v505_v62  ;;  %v2131_v17 = vsel %vm1332_vm6, 4294967295, %v2130_v17  ;;  %vm330_vm10 = vcmp.eq.s32.totalorder %v1282_v43, 2  ;;  %v506_v19 = vxor.u32 %v498_v61, %v490_v50  ;;  %vm1341_vm8 = vmxor %vm2089_vm14, %vm2095_vm2 }
  0x29   : > { %v519_v11 = vshrl.u32 %v511_v0, 16  ;;  %v520_v12 = vshrl.u32 %v512_v1, 16  ;;  %v2133_v14 = vsel %vm1341_vm8, 4294967295, %v2132_v14  ;;  %vm1348_vm13 = vmxor %vm297_vm7, %vm2095_vm2  ;;  %v2134_v20 = vmov 0 }
  0x2a   : > { %v2135_v20 = vsel %vm1348_vm13, 4294967295, %v2134_v20  ;;  %vm1354_vm9 = vmor %vm1296_vm11, %vm327_vm1  ;;  %v1360_v24 = vunpack.c.l.b16 %v280_v5  ;;  %v460_v25 = vxor.u32 42, %v452_v2  ;;  %v461_v26 = vxor.u32 42, %v453_v3 }
  0x2b   : > { %v1358_v23 = vxor.u32 %v519_v11, %v511_v0  ;;  %vm1366_vm7 = vmor %vm1303_vm12, %vm328_vm5  ;;  %v1370_v28 = vxor.u32 %v520_v12, %v512_v1  ;;  %v1372_v29 = vunpack.c.h.b16 %v280_v5  ;;  %v462_v30 = vxor.u32 42, %v454_v6 }
  0x2c   : > { %vm2140_vm11 = vcmp.eq.s32.totalorder %v1282_v43, 1  ;;  %v2141_v31 = vmov 0  ;;  %vm2143_vm14 = vcmp.eq.s32.totalorder %v1280_v42, 2  ;;  %v521_v33 = vshrl.u32 %v513_v7, 16  ;;  %vm1399_vm5 = vmor %vm1321_vm0, %vm330_vm10 }
  0x2d   : > { %vm1377_vm1 = vmxor %vm2140_vm11, %vm2095_vm2  ;;  %v339_v34 = vsel %vm1332_vm6, 1, %v1141_v16  ;;  %v340_v35 = vsel %vm1341_vm8, 1, %v1141_v16  ;;  %v467_v36 = vshrl.u32 %v459_v18, 16  ;;  %v514_v38 = vmul.u32 2221713035, %v506_v19 }
  0x2e   : > { %v2142_v31 = vsel %vm1377_vm1, 4294967295, %v2141_v31  ;;  %vm1385_vm12 = vmor %vm1311_vm15, %vm2143_vm14  ;;  %v623_v40 = vand.u32 65535, %v1358_v23  ;;  %vm2094_vm15 = vcmp.eq.s32.totalorder %v1360_v24, 1  ;;  %v468_v41 = vshrl.u32 %v460_v25, 16 }
  0x2f   : > { %vm1406_vm14 = vmxor %vm1354_vm9, %vm2095_vm2  ;;  %v469_v44 = vshrl.u32 %v461_v26, 16  ;;  %v624_v46 = vand.u32 65535, %v1370_v28  ;;  %v1421_v47 = vadd.s32 %v340_v35, %v339_v34  ;;  %v470_v49 = vshrl.u32 %v462_v30, 16 }
  0x30   : > { %vm1415_vm0 = vmxor %vm1366_vm7, %vm2095_vm2  ;;  %v1423_v50 = vxor.u32 %v521_v33, %v513_v7  ;;  %vm535_vm10 = vcmp.lt.u32.totalorder %v1358_v23, 644245094  ;;  %v475_v53 = vxor.u32 %v467_v36, %v459_v18  ;;  %v522_v54 = vshrl.u32 %v514_v38, 16 }
  0x31   : > { %vm1429_vm11 = vmxor %vm1385_vm12, %vm2095_vm2  ;;  %vm536_vm7 = vcmp.lt.u32.totalorder %v1370_v28, 644245094  ;;  %v2154_v55 = vmov 0  ;;  %v631_v57 = vmul.u32 29, %v623_v40  ;;  %vm2158_vm6 = vcmp.eq.s32.totalorder %v1372_v29, 1 }
  0x32   : > { %vm1437_vm9 = vmxor %vm1399_vm5, %vm2095_vm2  ;;  %vm537_vm12 = vcmp.lt.u32.totalorder %v1423_v50, 644245094  ;;  %v2159_v58 = vmov 0  ;;  %v476_v59 = vxor.u32 %v468_v41, %v460_v25  ;;  %v477_v60 = vxor.u32 %v469_v44, %v461_v26 }
  0x33   : > { %v2155_v55 = vsel %vm1437_vm9, 4294967295, %v2154_v55  ;;  %vm1444_vm8 = vmxor %vm2094_vm15, %vm2095_vm2  ;;  %v2161_v61 = vmov 0  ;;  %vm575_vm15 = vcmp.lt.u32.totalorder %v1358_v23, 515396075  ;;  %v632_v62 = vmul.u32 29, %v624_v46 }
  0x34   : > { %v2157_v56 = vsel %vm1444_vm8, 4294967295, %v2156_v56  ;;  %vm1452_vm4 = vmxor %vm2158_vm6, %vm2095_vm2  ;;  %v349_v63 = vshrl.u32 %v1421_v47, 16  ;;  %v478_v0 = vxor.u32 %v470_v49, %v462_v30  ;;  %v2163_v1 = vmov 0 }
  0x35   : > { %v2160_v58 = vsel %vm1452_vm4, 4294967295, %v2159_v58  ;;  %vm1458_vm5 = vmand %vm535_vm10, %vm1406_vm14  ;;  %vm576_vm2 = vcmp.lt.u32.totalorder %v1370_v28, 515396075  ;;  %vm307_vm3 = vcmp.eq.s32.totalorder %v1284_v48, 0  ;;  %v483_v2 = vmul.u32 2146121005, %v475_v53 }
  0x36   : > { %v2162_v61 = vsel %vm1458_vm5, 4294967295, %v2161_v61  ;;  %vm1466_vm6 = vmand %vm536_vm7, %vm1415_vm0  ;;  %vm591_vm10 = vcmp.lt.u32.totalorder %v1358_v23, 579820584  ;;  %vm592_vm9 = vcmp.lt.u32.totalorder %v1370_v28, 579820584  ;;  %v351_v4 = vcvt.s32.f32 %v349_v63 }
  0x37   : > { %v2164_v1 = vsel %vm1466_vm6, 4294967295, %v2163_v1  ;;  %vm1474_vm14 = vmand %vm537_vm12, %vm1429_vm11  ;;  %v345_v5 = vsel %vm1348_vm13, 1, %v1141_v16  ;;  %v1483_v6 = vxor.u32 %v522_v54, %v514_v38  ;;  %v639_v11 = vshrl.u32 %v631_v57, 16 }
  0x38   : > { %vm1487_vm0 = vmand %vm1458_vm5, %vm575_vm15  ;;  %v484_v12 = vmul.u32 2146121005, %v476_v59  ;;  %v485_v18 = vmul.u32 2146121005, %v477_v60  ;;  %v640_v22 = vshrl.u32 %v632_v62, 16  ;;  %v491_v26 = vshrl.u32 %v483_v2, 15  ;;  %354 = vadd.xlane.f32.xlu0 %v351_v4 }
  0x39   : > { %vm1493_vm11 = vmand %vm1466_vm6, %vm576_vm2  ;;  %v486_v25 = vmul.u32 2146121005, %v478_v0  ;;  %v346_v27 = vsel %vm1377_vm1, 1, %v1141_v16  ;;  %v341_v34 = vsel %vm1444_vm8, 1, %v1141_v16  ;;  %vm538_vm2 = vcmp.lt.u32.totalorder %v1483_v6, 644245094 }
  0x3a   : > { %vm1504_vm15 = vmand %vm1458_vm5, %vm591_vm10  ;;  %v492_v32 = vshrl.u32 %v484_v12, 15  ;;  %v386_v33 = vadd.s32 %v346_v27, %v345_v5  ;;  %vm2175_vm10 = vcmp.eq.s32.totalorder %v1284_v48, 1  ;;  %v493_v36 = vshrl.u32 %v485_v18, 15 }
  0x3b   : > { %vm1517_vm12 = vmand %vm1466_vm6, %vm592_vm9  ;;  %v342_v37 = vsel %vm1452_vm4, 1, %v1141_v16  ;;  %vm2178_vm7 = vmmov 1   ;;  %v647_v38 = vadd.s32 4, %v639_v11  ;;  %v494_v39 = vshrl.u32 %v486_v25, 15 }
  0x3c   : > { %vm1525_vm1 = vmor %vm2175_vm10, %vm307_vm3  ;;  %v388_v40 = vshrl.u32 %v386_v33, 16  ;;  %v360_v41 = vadd.s32 %v342_v37, %v341_v34  ;;  %v648_v45 = vadd.s32 4, %v640_v22  ;;  %v655_v46 = vsel %vm1487_vm0, 32, %v1242_v9 }
  0x3d   : > { %vm1535_vm9 = vmxor %vm1487_vm0, %vm2178_vm7  ;;  %v656_v49 = vsel %vm1493_vm11, 32, %v1244_v10  ;;  %v499_v52 = vxor.u32 %v491_v26, %v483_v2  ;;  %vm2183_vm10 = vnez %v2155_v55  ;;  %v500_v54 = vxor.u32 %v492_v32, %v484_v12 }
  0x3e   : > { %vm1542_vm3 = vmxor %vm1493_vm11, %vm2178_vm7  ;;  %v390_v57 = vcvt.s32.f32 %v388_v40  ;;  %v362_v59 = vshrl.u32 %v360_v41, 16  ;;  %v348_v60 = vand.u32 65535, %v1421_v47  ;;  %vm578_vm0 = vcmp.lt.u32.totalorder %v1483_v6, 515396075 }
  0x3f   : > { %vm1556_vm4 = vmand %vm538_vm2, %vm2183_vm10  ;;  %vm308_vm8 = vcmp.eq.s32.totalorder %v1287_v51, 0  ;;  %v501_v55 = vxor.u32 %v493_v36, %v485_v18  ;;  %v361_v62 = vand.u32 65535, %v360_v41  ;;  %v502_v47 = vxor.u32 %v494_v39, %v486_v25 }
  0x40   : > { %vm615_vm11 = vmand %vm1504_vm15, %vm1535_vm9  ;;  %393 = vadd.xlane.f32.xlu1 %v390_v57  ;;  %v364_v0 = vcvt.s32.f32 %v362_v59  ;;  %v387_v2 = vand.u32 65535, %v386_v33  ;;  %vm2186_vm10 = vcmp.lt.u32.totalorder %v1423_v50, 515396075  ;;  %v2187_v4 = vmov 0 }
  0x41   : > { %vm616_vm2 = vmand %vm1517_vm12, %vm1542_vm3  ;;  %v1571_v63 = vsel %vm615_vm11, %v647_v38, %v655_v46  ;;  %vm309_vm9 = vcmp.eq.s32.totalorder %v1360_v24, 0  ;;  %v507_v7 = vmul.u32 2221713035, %v499_v52  ;;  %v363_v11 = vcvt.s32.f32 %v361_v62 }
  0x42   : > { %vm1577_vm15 = vmand %vm1474_vm14, %vm2186_vm10  ;;  %v1581_v5 = vsel %vm616_vm2, %v648_v45, %v656_v49  ;;  %v2189_v12 = vmov 0  ;;  %vm310_vm3 = vcmp.eq.s32.totalorder %v1372_v29, 0  ;;  %v508_v19 = vmul.u32 2221713035, %v500_v54  ;;  %367 = vadd.xlane.f32.xlu0 %v364_v0 }
  0x43   : > { %v2188_v4 = vsel %vm1577_vm15, 4294967295, %v2187_v4  ;;  %vm1588_vm12 = vmand %vm1556_vm4, %vm578_vm0  ;;  %v669_v18 = vpack.c.b16 %v1581_v5, %v1571_v63  ;;  %v350_v22 = vcvt.s32.f32 %v348_v60  ;;  %vm2191_vm11 = vcmp.eq.s32.totalorder %v1287_v51, 1 }
  0x44   : > { %v2190_v12 = vsel %vm1588_vm12, 4294967295, %v2189_v12  ;;  %vm1600_vm2 = vmor %vm2191_vm11, %vm308_vm8  ;;  %vm323_vm0 = vcmp.eq.s32.totalorder %v1284_v48, 2  ;;  %v509_v26 = vmul.u32 2221713035, %v501_v55  ;;  %vm2194_vm10 = vcmp.eq.s32.totalorder %v1360_v24, 1  ;;  %365 = vadd.xlane.f32.xlu1 %v363_v11 }
  0x45   : > { %vm1607_vm13 = vmor %vm2194_vm10, %vm309_vm9  ;;  %vm324_vm6 = vcmp.eq.s32.totalorder %v1287_v51, 2  ;;  %v510_v30 = vmul.u32 2221713035, %v502_v47  ;;  %v389_v32 = vcvt.s32.f32 %v387_v2  ;;  %vm2197_vm5 = vcmp.eq.s32.totalorder %v1372_v29, 1  ;;  %673 = vst [vmem:[%s267_s26 + $0x10] sm:$0xff] %v669_v18 }
  0x46   : > { %vm1614_vm8 = vmor %vm2197_vm5, %vm310_vm3  ;;  %vm325_vm11 = vcmp.eq.s32.totalorder %v1360_v24, 2  ;;  %v515_v34 = vshrl.u32 %v507_v7, 16  ;;  %vm326_vm9 = vcmp.eq.s32.totalorder %v1372_v29, 2  ;;  %v516_v36 = vshrl.u32 %v508_v19, 16  ;;  %352 = vadd.xlane.f32.xlu0 %v350_v22 }
  0x47   : > { %vm1628_vm10 = vmor %vm1525_vm1, %vm323_vm0  ;;  %vm593_vm5 = vcmp.lt.u32.totalorder %v1423_v50, 579820584  ;;  %vm594_vm3 = vcmp.lt.u32.totalorder %v1483_v6, 579820584  ;;  %v517_v28 = vshrl.u32 %v509_v26, 16  ;;  %v518_v38 = vshrl.u32 %v510_v30, 16 }
  0x48   : > { %vm1636_vm12 = vmor %vm1600_vm2, %vm324_vm6  ;;  %391 = vadd.xlane.f32.xlu1 %v389_v32  ;;  %v374_v39 = vand.u32 65535, %v1273_v21  ;;  %v1653_v41 = vxor.u32 %v515_v34, %v507_v7  ;;  %v2209_v44 = vmov 0  ;;  %v2211_v45 = vmov 0 }
  0x49   : > { %vm1642_vm1 = vmor %vm1607_vm13, %vm325_vm11  ;;  %v2213_v21 = vmov 0  ;;  %v2216_v46 = vmov 0  ;;  %v524_v49 = vxor.u32 %v516_v36, %v508_v19  ;;  %v1694_v57 = vxor.u32 %v517_v28, %v509_v26 }
  0x4a   : > { %vm1649_vm0 = vmor %vm1614_vm8, %vm326_vm9  ;;  %vm2215_vm8 = vnez %v2190_v12  ;;  %v376_v54 = vcvt.s32.f32 %v374_v39  ;;  %v561_v55 = vsel %vm1474_vm14, %v1280_v42, 4294967196  ;;  %v526_v62 = vxor.u32 %v518_v38, %v510_v30 }
  0x4b   : > { %vm1657_vm6 = vmand %vm1474_vm14, %vm593_vm5  ;;  %vm2227_vm14 = vnez %v2164_v1  ;;  %v562_v3 = vsel %vm1556_vm4, %v1282_v43, 4294967196  ;;  %v625_v0 = vand.u32 65535, %v1423_v50  ;;  %v619_v1 = vand.u32 65535, %v1653_v41 }
  0x4c   : > { %v2210_v44 = vsel %vm1657_vm6, 4294967295, %v2209_v44  ;;  %vm1663_vm13 = vmand %vm1556_vm4, %vm594_vm3  ;;  %378 = vadd.xlane.f32.xlu0 %v376_v54  ;;  %vm571_vm4 = vcmp.lt.u32.totalorder %v1653_v41, 515396075  ;;  %v626_v53 = vand.u32 65535, %v1483_v6  ;;  %v620_v22 = vand.u32 65535, %v524_v49 }
  0x4d   : > { %v2212_v45 = vsel %vm1663_vm13, 4294967295, %v2211_v45  ;;  %vm1670_vm2 = vmxor %vm1577_vm15, %vm2178_vm7  ;;  %vm2228_vm15 = vcmp.lt.u32.totalorder %v1653_v41, 644245094  ;;  %v621_v27 = vand.u32 65535, %v1694_v57  ;;  %v2237_v33 = vmov 0 }
  0x4e   : > { %v2214_v21 = vsel %vm1670_vm2, 4294967295, %v2213_v21  ;;  %vm1677_vm11 = vmxor %vm2215_vm8, %vm2178_vm7  ;;  %vm2222_vm8 = vnez %v2162_v61  ;;  %v560_v61 = vsel %vm2227_vm14, %v1244_v10, 4294967196  ;;  %v622_v34 = vand.u32 65535, %v526_v62 }
  0x4f   : > { %v2217_v46 = vsel %vm1677_vm11, 4294967295, %v2216_v46  ;;  %vm1690_vm9 = vmxor %vm1628_vm10, %vm2178_vm7  ;;  %v559_v60 = vsel %vm2222_vm8, %v1242_v9, 4294967196  ;;  %vm532_vm10 = vcmp.lt.u32.totalorder %v524_v49, 644245094  ;;  %v566_v25 = vpack.c.b16 %v562_v3, %v560_v61 }
  0x50   : > { %vm1700_vm3 = vmxor %vm1636_vm12, %vm2178_vm7  ;;  %vm533_vm12 = vcmp.lt.u32.totalorder %v1694_v57, 644245094  ;;  %v565_v7 = vpack.c.b16 %v561_v55, %v559_v60  ;;  %v633_v23 = vmul.u32 29, %v625_v0  ;;  %v2239_v37 = vmov 0 }
  0x51   : > { %vm1713_vm5 = vmxor %vm1642_vm1, %vm2178_vm7  ;;  %vm534_vm1 = vcmp.lt.u32.totalorder %v526_v62, 644245094  ;;  %v627_v28 = vmul.u32 29, %v619_v1  ;;  %v634_v35 = vmul.u32 29, %v626_v53  ;;  %v2241_v38 = vmov 0  ;;  %570 = vst [vmem:[%s274_s16 + $0x18] sm:$0xff] %v566_v25 }
  0x52   : > { %vm1721_vm8 = vmxor %vm1649_vm0, %vm2178_vm7  ;;  %v628_v39 = vmul.u32 29, %v620_v22  ;;  %569 = vst [vmem:[%s274_s16 + $0x10] sm:$0xff] %v565_v7  ;;  %v630_v54 = vmul.u32 29, %v622_v34  ;;  %vm2252_vm11 = vnez %v2135_v20 }
  0x53   : > { %vm1737_vm0 = vmand %vm2228_vm15, %vm1690_vm9  ;;  %vm572_vm9 = vcmp.lt.u32.totalorder %v524_v49, 515396075  ;;  %v635_v60 = vshrl.u32 %v627_v28, 16  ;;  %v642_v55 = vshrl.u32 %v634_v35, 16 }
  0x54   : > { %vm1743_vm14 = vmand %vm532_vm10, %vm1700_vm3  ;;  %v555_v50 = vsel %vm1737_vm0, %v1284_v48, 4294967196  ;;  %vm588_vm10 = vcmp.lt.u32.totalorder %v524_v49, 579820584  ;;  %v629_v49 = vmul.u32 29, %v621_v27  ;;  %v638_v3 = vshrl.u32 %v630_v54, 16 }
  0x55   : > { %vm1755_vm15 = vmand %vm533_vm12, %vm1713_vm5  ;;  %v556_v19 = vsel %vm1743_vm14, %v1287_v51, 4294967196  ;;  %vm573_vm5 = vcmp.lt.u32.totalorder %v1694_v57, 515396075  ;;  %v643_v2 = vadd.s32 4, %v635_v60  ;;  %v650_v10 = vadd.s32 4, %v642_v55 }
  0x56   : > { %vm1767_vm3 = vmand %vm534_vm1, %vm1721_vm8  ;;  %v557_v26 = vsel %vm1755_vm15, %v1360_v24, 4294967196  ;;  %v637_v9 = vshrl.u32 %v629_v49, 16 }
  0x57   : > { %v558_v30 = vsel %vm1767_vm3, %v1372_v29, 4294967196  ;;  %v563_v32 = vpack.c.b16 %v557_v26, %v555_v50  ;;  %vm1783_vm12 = vmand %vm1737_vm0, %vm571_vm4 }
  0x58   : > { %v2238_v33 = vsel %vm1783_vm12, 4294967295, %v2237_v33  ;;  %v564_v36 = vpack.c.b16 %v558_v30, %v556_v19  ;;  %vm1790_vm8 = vmand %vm1743_vm14, %vm572_vm9  ;;  %vm590_vm12 = vcmp.lt.u32.totalorder %v526_v62, 579820584  ;;  %vm2246_vm9 = vcmp.lt.u32.totalorder %v1653_v41, 579820584 }
  0x59   : > { %v2240_v37 = vsel %vm1790_vm8, 4294967295, %v2239_v37  ;;  %567 = vst [vmem:[%s274_s16] sm:$0xff] %v563_v32  ;;  %vm1797_vm4 = vmand %vm1755_vm15, %vm573_vm5  ;;  %vm2243_vm8 = vcmp.lt.u32.totalorder %v526_v62, 515396075  ;;  %v636_v62 = vshrl.u32 %v628_v39, 16  ;;  %vm2259_vm13 = vnez %v2238_v33 }
  0x5a   : > { %v2242_v38 = vsel %vm1797_vm4, 4294967295, %v2241_v38  ;;  %568 = vst [vmem:[%s274_s16 + $0x8] sm:$0xff] %v564_v36  ;;  %vm1812_vm5 = vmand %vm1767_vm3, %vm2243_vm8  ;;  %vm589_vm4 = vcmp.lt.u32.totalorder %v1694_v57, 579820584  ;;  %v641_v57 = vshrl.u32 %v633_v23, 16  ;;  %v651_v53 = vsel %vm2259_vm13, 32, %v1284_v48 }
  0x5b   : > { %vm1821_vm2 = vmand %vm1737_vm0, %vm2246_vm9  ;;  %v644_v1 = vadd.s32 4, %v636_v62  ;;  %vm2269_vm9 = vnez %v2190_v12  ;;  %v645_v25 = vadd.s32 4, %v637_v9  ;;  %s1020_s16 = sshll.u32 %s1142_s15, 4  ;;  %s1021_s16 = int_to_ptr.vmem [resolvable:$false] %s1020_s16 }
  0x5c   : > { %vm1827_vm8 = vmand %vm1743_vm14, %vm588_vm10  ;;  %v649_v7 = vadd.s32 4, %v641_v57  ;;  %vm2268_vm10 = vnez %v2188_v4  ;;  %v658_v19 = vsel %vm2269_vm9, 32, %v1282_v43  ;;  %v654_v4 = vsel %vm1812_vm5, 32, %v1372_v29  ;;  %s1022_s17 = scalar_lea.vmem %s1021_s16, 512  ;;  %p1023_p1 = scmp.lt.s32.totalorder %s731_s12, %s1021_s16 }
  0x5d   : > { %vm1837_vm0 = vmand %vm1755_vm15, %vm589_vm4  ;;  %vm2265_vm4 = vnez %v2242_v38  ;;  %v657_v11 = vsel %vm2268_vm10, 32, %v1280_v42  ;;  %v646_v42 = vadd.s32 4, %v638_v3  ;;  %vm2273_vm10 = vnez %v2214_v21  ;;  %p1024_p2 = scmp.lt.s32.totalorder %s1022_s17, %s1016_s14 }
  0x5e   : > { %vm1843_vm14 = vmand %vm1767_vm3, %vm590_vm12  ;;  %vm2262_vm3 = vnez %v2240_v37  ;;  %v653_v43 = vsel %vm2265_vm4, 32, %v1360_v24 }
  0x5f   : > { %vm1854_vm15 = vmxor %vm2259_vm13, %vm2178_vm7  ;;  %v652_v48 = vsel %vm2262_vm3, 32, %v1287_v51  ;;  %p1025_p3 = por %p1024_p2, %p1023_p1 }
  0x60   : > { %vm1861_vm12 = vmxor %vm2262_vm3, %vm2178_vm7 }
  0x61   : > { %vm1868_vm6 = vmxor %vm2265_vm4, %vm2178_vm7  ;;  %vm2278_vm4 = vnez %v2131_v17  ;;  %p1026_p4 = pnand %p1025_p3, %p1019_p0 }
  0x62   : > { %vm1884_vm1 = vmxor %vm1812_vm5, %vm2178_vm7 }
  0x63   : > { %vm611_vm13 = vmand %vm1821_vm2, %vm1854_vm15  ;;  %vm2272_vm2 = vnez %v2210_v44  ;;  %vm2275_vm15 = vnez %v2212_v45 }
  0x64   : > { %vm612_vm7 = vmand %vm1827_vm8, %vm1861_vm12  ;;  %v659_v51 = vsel %vm611_vm13, %v643_v2, %v651_v53  ;;  %vm2276_vm8 = vnez %v2217_v46  ;;  %vm2279_vm13 = vnez %v2157_v56 }
  0x65   : > { %vm2274_vm9 = vmand %vm2272_vm2, %vm2273_vm10  ;;  %v660_v29 = vsel %vm612_vm7, %v644_v1, %v652_v48 }
  0x66   : > { %v665_v24 = vsel %vm2274_vm9, %v649_v7, %v657_v11  ;;  %vm2277_vm3 = vmand %vm2275_vm15, %vm2276_vm8  ;;  %v667_v21 = vpack.c.b16 %v660_v29, %v659_v51  ;;  %vm2284_vm9 = vnez %v2142_v31  ;;  %vm2285_vm15 = vnez %v2121_v15 }
  0x67   : > { %v666_v12 = vsel %vm2277_vm3, %v650_v10, %v658_v19  ;;  %vm613_vm5 = vmand %vm1837_vm0, %vm1868_vm6  ;;  %vm2280_vm6 = vnez %v2119_v13 }
  0x68   : > { %vm614_vm12 = vmand %vm1843_vm14, %vm1884_vm1  ;;  %v661_v44 = vsel %vm613_vm5, %v645_v25, %v653_v43  ;;  %v670_v46 = vpack.c.b16 %v666_v12, %v665_v24  ;;  %671 = vst [vmem:[%s267_s26] sm:$0xff] %v667_v21  ;;  %vm2282_vm1 = vnez %v2133_v14  ;;  %vm2283_vm14 = vnez %v2160_v58 }
  0x69   : > { %v662_v45 = vsel %vm614_vm12, %v646_v42, %v654_v4  ;;  %vm675_vm2 = vmpackc.low %vm2279_vm13, %vm2278_vm4 }
  0x6a   : > { %v668_v6 = vpack.c.b16 %v662_v45, %v661_v44  ;;  %vm2281_vm0 = vmpackc.low %vm2252_vm11, %vm2280_vm6  ;;  %674 = vst [vmem:[%s267_s26 + $0x18] sm:$0xff] %v670_v46 }
  0x6b   : > { %vm677_vm7 = vmpackc.even %vm2281_vm0, %vm675_vm2 }
  0x6c   : > { %vm678_vm10 = vmpackc.low %vm2283_vm14, %vm2282_vm1  ;;  %672 = vst [vmem:[%s267_s26 + $0x8] sm:$0xff] %v668_v6  ;;  %v681_v13 = vsel %vm677_vm7, 16843009, %v1141_v16 }
  0x6d   : > { %vm2286_vm8 = vmpackc.low %vm2284_vm9, %vm2285_vm15  ;;  %683 = vst [vmem:[%s240_s8] sm:$0xff] %v681_v13 }
  0x6e   : > { %vm680_vm3 = vmpackc.even %vm2286_vm8, %vm678_vm10 }
  0x6f   : > { %v682_v17 = vsel %vm680_vm3, 16843009, %v1141_v16 }
  0x70   : > { %684 = vst [vmem:[%s240_s8 + $0x8] sm:$0xff] %v682_v17 }
  0x71   : > { %1029 = shalt.err (!%p1026_p4)
}
  0x72   : > { %s1030_s25 = scalar_lea.hbm %s1959_s11, 256  ;;  %s1034_s7 = scalar_lea.hbm %s2084_s3, 512 }
  0x73   : > { %p1031_p7 = scmp.ne.s32.totalorder %s1959_s11, %s1030_s25  ;;  %p1035_p10 = scmp.lt.u32.totalorder %s1959_s11, %s2084_s3 }
  0x74   : > { %p1036_p11 = scmp.lt.u32.totalorder %s1034_s7, %s1030_s25  ;;  %p1038_p13 = scmp.lt.u32.totalorder %s1030_s25, %s1959_s11 }
  0x75   : > { %p1032_p8 = pnand %p1031_p7, %p1217_p5 }
  0x76   : > { %p1037_p12 = por %p1036_p11, %p1035_p10 }
  0x77   : > { %p1033_p9 = pneg %p1032_p8 }
  0x78   : > { %p1039_p0 = por %p1038_p13, %p1037_p12 }
  0x7a   : > { %p1040_p1 = pnand %p1039_p0, %p1033_p9 }
  0x7c   : > { %1043 = shalt.err (!%p1040_p1)
}
  0x7d   : > { %963 = dma.vmem_to_hbm [thread:$0]  (%p1217_p5), %s731_s12, 256, %s1959_s11, %s698_s13   ;;  %v401_v26 = vmul.u32 4, %v1240_v8 }
  0x7e   : > { %s936_s10 = sshll.u32 %s1950_s30, 5  ;;  %s702_s12 = sand.u32 1, %s1198_s22  }
  0x7f   : > { %s247_s11 = scalar_lea.vmem [#allocation4], %s936_s10  ;;  %s937_s13 = sshll.u32 %s1950_s30, 3 }
  0x80   : > { %s962_s14 = sshll.u32 %s1198_s22, 9  ;;  %s743_s15 = sshll.u32 %s247_s11, 4  ;;  %s1989_s15 = int_to_ptr.vmem [resolvable:$true] %s743_s15 }
  0x81   : > { %s1987_s25 = scalar_lea.hbm %s2085_s4, %s962_s14  ;;  %s955_s30 = sshll.u32 %s1198_s22, 7 }
  0x82   : > { %s1992_s26 = scalar_lea.vmem [#allocation6], %s937_s13  ;;  %s1999_s7 = scalar_lea.sflag [#allocation5], %s702_s12 }
  0x83   : > { %s759_s6 = sshll.u32 %s1992_s26, 4  ;;  %s1044_s8 = scalar_lea.vmem %s1989_s15, 512  ;;  %s2036_s6 = int_to_ptr.vmem [resolvable:$true] %s759_s6 }
  0x84   : > { %p1045_p2 = scmp.ne.s32.totalorder %s1989_s15, %s1044_s8  ;;  %s1143_s9 = smov [#allocation4]  }
  0x85   : > { %s1048_s10 = sshll.u32 %s1143_s9, 4  ;;  %s1049_s10 = int_to_ptr.vmem [resolvable:$false] %s1048_s10 }
  0x86   : > { %p1046_p3 = pnand %p1045_p2, %p1217_p5  ;;  %s1050_s13 = scalar_lea.vmem %s1049_s10, 1024 }
  0x87   : > { %p1051_p7 = scmp.lt.s32.totalorder %s1989_s15, %s1049_s10  ;;  %p1052_p8 = scmp.lt.s32.totalorder %s1050_s13, %s1044_s8 }
  0x88   : > { %p1047_p4 = pneg %p1046_p3 }
  0x89   : > { %p1053_p9 = por %p1052_p8, %p1051_p7 }
  0x8b   : > { %p1054_p10 = pnand %p1053_p9, %p1047_p4 }
  0xb4   : > { %v381_v15 = vpop.xlane.xlu1 %380 }
  0xb5   : > { %v383_v23 = vcvt.f32.s32 %v381_v15 }
  0xb7   : > { %v384_v49 = vshll.u32 %v383_v23, 16 }
  0xc5   : > { %v355_v14 = vpop.xlane.xlu0 %354 }
  0xc6   : > { %v357_v56 = vcvt.f32.s32 %v355_v14 }
  0xc8   : > { %v358_v32 = vshll.u32 %v357_v56, 16 }
  0xcd   : > { %v394_v20 = vpop.xlane.xlu1 %393 }
  0xce   : > { %v396_v5 = vcvt.f32.s32 %v394_v20 }
  0xcf   : > { %v368_v31 = vpop.xlane.xlu0 %367 }
  0xd0   : > { %v370_v58 = vcvt.f32.s32 %v368_v31  ;;  %v397_v37 = vshll.u32 %v396_v5, 16 }
  0xd1   : > { %v366_v63 = vpop.xlane.xlu1 %365 }
  0xd2   : > { %v371_v18 = vshll.u32 %v370_v58, 16  ;;  %v369_v27 = vcvt.f32.s32 %v366_v63 }
  0xd3   : > { %v353_v30 = vpop.xlane.xlu0 %352 }
  0xd4   : > { %v372_v33 = vadd.s32 %v371_v18, %v369_v27  ;;  %v356_v34 = vcvt.f32.s32 %v353_v30 }
  0xd5   : > { %v392_v36 = vpop.xlane.xlu1 %391 }
  0xd6   : > { %v403_v28 = vsub.s32 %v372_v33, %v401_v26  ;;  %v359_v35 = vadd.s32 %v358_v32, %v356_v34  ;;  %v395_v38 = vcvt.f32.s32 %v392_v36 }
  0xd8   : > { %vm408_vm11 = vcmp.gt.s32.totalorder %v403_v28, 0  ;;  %v402_v39 = vsub.s32 %v359_v35, %v401_v26  ;;  %v398_v40 = vadd.s32 %v397_v37, %v395_v38 }
  0xd9   : > { %v409_v52 = vsel %vm408_vm11, %v403_v28, 0  ;;  %v379_v8 = vpop.xlane.xlu0 %378 }
  0xda   : > { %vm416_vm5 = vcmp.lt.s32.totalorder %v409_v52, 4  ;;  %vm406_vm12 = vcmp.gt.s32.totalorder %v402_v39, 0  ;;  %v405_v54 = vsub.s32 %v398_v40, %v401_v26  ;;  %v382_v59 = vcvt.f32.s32 %v379_v8 }
  0xdb   : > { %v417_v60 = vsel %vm416_vm5, %v409_v52, 4  ;;  %v407_v57 = vsel %vm406_vm12, %v402_v39, 0 }
  0xdc   : > { %423 = vst [vmem:[%s247_s11 + $0x8] sm:$0xff] %v417_v60  ;;  %vm414_vm4 = vcmp.lt.s32.totalorder %v407_v57, 4  ;;  %vm412_vm13 = vcmp.gt.s32.totalorder %v405_v54, 0  ;;  %v385_v55 = vadd.s32 %v384_v49, %v382_v59  ;;  %vm427_vm0 = vcmp.gt.s32.totalorder %v417_v60, 0 }
  0xdd   : > { %v415_v41 = vsel %vm414_vm4, %v407_v57, 4  ;;  %v413_v62 = vsel %vm412_vm13, %v405_v54, 0 }
  0xde   : > { %422 = vst [vmem:[%s247_s11] sm:$0xff] %v415_v41  ;;  %vm420_vm2 = vcmp.lt.s32.totalorder %v413_v62, 4  ;;  %v404_v47 = vsub.s32 %v385_v55, %v401_v26  ;;  %vm426_vm7 = vcmp.gt.s32.totalorder %v415_v41, 0 }
  0xdf   : > { %v421_v9 = vsel %vm420_vm2, %v413_v62, 4  ;;  %vm1995_vm9 = vmpackc.low %vm427_vm0, %vm426_vm7 }
  0xe0   : > { %425 = vst [vmem:[%s247_s11 + $0x18] sm:$0xff] %v421_v9  ;;  %vm410_vm6 = vcmp.gt.s32.totalorder %v404_v47, 0  ;;  %vm429_vm1 = vcmp.gt.s32.totalorder %v421_v9, 0 }
  0xe1   : > { %v411_v61 = vsel %vm410_vm6, %v404_v47, 0 }
  0xe2   : > { %vm418_vm14 = vcmp.lt.s32.totalorder %v411_v61, 4 }
  0xe3   : > { %v419_v3 = vsel %vm418_vm14, %v411_v61, 4 }
  0xe4   : > { %424 = vst [vmem:[%s247_s11 + $0x10] sm:$0xff] %v419_v3  ;;  %vm428_vm10 = vcmp.gt.s32.totalorder %v419_v3, 0 }
  0xe5   : > { %1057 = shalt.err (!%p1054_p10)
}
  0xe6   : > { %s1058_s11 = scalar_lea.hbm %s1987_s25, 512  ;;  %s1062_s16 = scalar_lea.hbm %s2085_s4, 1024 }
  0xe7   : > { %p1059_p11 = scmp.ne.s32.totalorder %s1987_s25, %s1058_s11  ;;  %p1063_p0 = scmp.lt.u32.totalorder %s1987_s25, %s2085_s4 }
  0xe8   : > { %p1064_p1 = scmp.lt.u32.totalorder %s1062_s16, %s1058_s11  ;;  %p1066_p3 = scmp.lt.u32.totalorder %s1058_s11, %s1987_s25 }
  0xe9   : > { %p1060_p12 = pnand %p1059_p11, %p1217_p5 }
  0xea   : > { %p1065_p2 = por %p1064_p1, %p1063_p0 }
  0xeb   : > { %p1061_p13 = pneg %p1060_p12 }
  0xec   : > { %p1067_p4 = por %p1066_p3, %p1065_p2 }
  0xee   : > { %p1068_p7 = pnand %p1067_p4, %p1061_p13 }
  0xf0   : > { %1071 = shalt.err (!%p1068_p7)
}
  0xf1   : > { %s1144_s8 = smov 128   ;;  %s1145_s10 = smov 8   ;;  %vm431_vm15 = vmpackc.low %vm429_vm1, %vm428_vm10 }
  0xf2   : > { %964 = dma.vmem_to_hbm [thread:$0]  (%p1217_p5), %s1989_s15, 512, %s1987_s25, %s1999_s7, %s1144_s8, %s1144_s8, %s1145_s10   ;;  %vm432_vm8 = vmpackc.even %vm431_vm15, %vm1995_vm9 }
  0xf3   : > { %s2032_s12 = scalar_lea.hbm %s2086_s5, %s955_s30  ;;  %v433_v2 = vsel %vm432_vm8, 16843009, %v1141_v16  ;;  %s1072_s15 = scalar_lea.vmem %s2036_s6, 128 }
  0xf4   : > { %434 = vst [vmem:[%s1992_s26] sm:$0xff] %v433_v2  ;;  %p1073_p8 = scmp.ne.s32.totalorder %s2036_s6, %s1072_s15  ;;  %s1146_s22 = smov [#allocation6]  }
  0xf5   : > { %s1076_s25 = sshll.u32 %s1146_s22, 4  ;;  %s1077_s25 = int_to_ptr.vmem [resolvable:$false] %s1076_s25 }
  0xf6   : > { %p1074_p9 = pnand %p1073_p8, %p1217_p5  ;;  %s1078_s14 = scalar_lea.vmem %s1077_s25, 256 }
  0xf7   : > { %p1079_p11 = scmp.lt.s32.totalorder %s2036_s6, %s1077_s25  ;;  %p1080_p12 = scmp.lt.s32.totalorder %s1078_s14, %s1072_s15 }
  0xf8   : > { %p1075_p10 = pneg %p1074_p9 }
  0xf9   : > { %p1081_p13 = por %p1080_p12, %p1079_p11 }
  0xfb   : > { %p1082_p0 = pnand %p1081_p13, %p1075_p10 }
  0xfd   : > { %1085 = shalt.err (!%p1082_p0)
}
  0xfe   : > { %s1086_s30 = scalar_lea.hbm %s2032_s12, 128  ;;  %s1090_s17 = scalar_lea.hbm %s2086_s5, 256 }
  0xff   : > { %p1087_p1 = scmp.ne.s32.totalorder %s2032_s12, %s1086_s30  ;;  %p1091_p4 = scmp.lt.u32.totalorder %s2032_s12, %s2086_s5 }
 0x100   : > { %p1092_p7 = scmp.lt.u32.totalorder %s1090_s17, %s1086_s30  ;;  %p1094_p9 = scmp.lt.u32.totalorder %s1086_s30, %s2032_s12 }
 0x101   : > { %p1088_p2 = pnand %p1087_p1, %p1217_p5 }
 0x102   : > { %p1093_p8 = por %p1092_p7, %p1091_p4 }
 0x103   : > { %p1089_p3 = pneg %p1088_p2 }
 0x104   : > { %p1095_p10 = por %p1094_p9, %p1093_p8 }
 0x106   : > { %p1096_p11 = pnand %p1095_p10, %p1089_p3 }
 0x108   : > { %1099 = shalt.err (!%p1096_p11)
}
 0x109   : > { %965 = dma.vmem_to_hbm [thread:$0]  (%p1217_p5), %s2036_s6, 128, %s2032_s12, %s1999_s7  }
 0x10a PF: > { %p979_p12 = scmp.ge.s32.totalorder %s1138_s21, 2  ;;  %s789_s10 = sand.u32 1, %s1126_s18  }
 0x10b   : > { %s790_s13 = scalar_lea.sflag [#allocation3], %s789_s10 }
 0x10c   : > { %p970_p13 = pnand %p979_p12, %p1221_p6 }
 0x10e   : > { %1117 = dma.done.wait (!%p970_p13), %s790_s13, 256  }
 0x10f   : > { %1119 = vsyncadd (!%p970_p13), %s790_s13, 4294967040  ;;  %s798_s11 = sand.u32 1, %s931_s23  }
 0x110   : > { %s799_s15 = scalar_lea.sflag [#allocation5], %s798_s11 }
 0x111   : > { %1121 = dma.done.wait (!%p970_p13), %s799_s15, 640  }
 0x112   : > { %1123 = vsyncadd (!%p970_p13), %s799_s15, 4294966656  ;;  %p19_p5 = scmp.ge.s32.totalorder %s1202_s24, 4   ;;  %s2289_s18 = smov %s1130_s19 }
 0x113   : > { %s2290_s19 = smov %s1134_s20  ;;  %s2291_s20 = smov %s1215_s27 }
 0x114   : > { %s2292_s21 = smov %s1202_s24  ;;  %21 = sbr.rel (!%p19_p5) target bundleno = 5 (0x5), region = 115 }
 0x11b   :  { %813 = vsyncpa [#allocation3], 1 }
 0x11c   :  { %815 = vsyncpa [#allocation3 + $0x1], 1 }
 0x11d   :  { %816 = vsyncpa [#allocation5], 1 }
 0x11e   :  { %818 = vsyncpa [#allocation5 + $0x1], 1 }

</bundles_post_ra>
